<compile_context>
chip_gen: v6e
topology: v6e:2x2x1
jax: 0.10.0
libtpu: 0.0.40
codegen_flags: <defaults>
</compile_context>

<pallas_src>
import functools

import jax
import jax.numpy as jnp
from jax import lax
from jax.experimental import pallas as pl
from jax.experimental.pallas import tpu as pltpu

_EPS = 1e-6  # torch F.pairwise_distance default eps


def _triplet_kernel(a_ref, p_ref, n_ref, psum_ref, *,
                    margin, batch, block_rows, chunk, num_chunks, ragged):
    tb = a_ref.shape[0]

    if num_chunks == 1:
        # Small / non-128-multiple feature dims: single pass over the tile.
        a = a_ref[...].astype(jnp.float32)
        p = p_ref[...].astype(jnp.float32)
        n = n_ref[...].astype(jnp.float32)
        dp = (a - p) + _EPS
        dn = (a - n) + _EPS
        pos_sq = jnp.sum(dp * dp, axis=-1, keepdims=True)   # (TB, 1)
        neg_sq = jnp.sum(dn * dn, axis=-1, keepdims=True)   # (TB, 1)
    else:
        # Chunked compute: bound the f32 working set to O(TB * chunk) and do a
        # single cross-lane reduction at the end.
        def body(c, carry):
            pos_acc, neg_acc = carry
            off = pl.multiple_of(c * chunk, chunk)
            a = a_ref[:, pl.ds(off, chunk)].astype(jnp.float32)
            p = p_ref[:, pl.ds(off, chunk)].astype(jnp.float32)
            n = n_ref[:, pl.ds(off, chunk)].astype(jnp.float32)
            dp = (a - p) + _EPS
            dn = (a - n) + _EPS
            return pos_acc + dp * dp, neg_acc + dn * dn

        init = (jnp.zeros((tb, chunk), jnp.float32),
                jnp.zeros((tb, chunk), jnp.float32))
        pos_acc, neg_acc = lax.fori_loop(0, num_chunks, body, init, unroll=True)
        pos_sq = jnp.sum(pos_acc, axis=-1, keepdims=True)   # (TB, 1)
        neg_sq = jnp.sum(neg_acc, axis=-1, keepdims=True)   # (TB, 1)

    pos_d = jnp.sqrt(pos_sq)
    neg_d = jnp.sqrt(neg_sq)
    hinge = jnp.maximum(pos_d - neg_d + margin, 0.0)         # (TB, 1)

    psum = jnp.sum(hinge)
    if ragged:
        # Only the last tile contains padded rows -> mask only there.
        row = (pl.program_id(0) * block_rows
               + lax.broadcasted_iota(jnp.int32, hinge.shape, 0))
        masked = jnp.sum(jnp.where(row < batch, hinge, 0.0))
        is_last = pl.program_id(0) == pl.num_programs(0) - 1
        psum = jnp.where(is_last, masked, psum)

    # Per-tile partial sum to SMEM; final mean happens in the wrapper.
    psum_ref[0, 0] = psum


def _choose_feature_chunk(D):
    """Feature chunk width for the in-kernel compute loop."""
    for c in (512, 256, 128):
        if D % c == 0:
            return c
    return D  # no chunking; full feature dim in one pass


def _choose_block_rows(B, D, itemsize, chunk, *, buffer_count=2,
                       input_budget_bytes=24 * 1024 * 1024,
                       compute_budget_bytes=8 * 1024 * 1024):
    """Largest batch tile whose pipelined inputs AND f32 compute temps fit.

    Input pipeline buffers: 3 arrays x buffer_count x (TB * D * itemsize).
    Compute working set (chunked): ~2 f32 accumulators + ~4 live f32 chunk
    temps -> ~6 * chunk * 4 bytes per row.  Total worst case
    24 MiB + 8 MiB = 32 MiB, under the explicit 48 MiB vmem_limit_bytes on
    every generation (v7x physical VMEM is 64 MiB per TC).
    """
    in_per_row = 3 * buffer_count * D * itemsize
    comp_per_row = 6 * chunk * 4
    tb = min(input_budget_bytes // in_per_row,
             compute_budget_bytes // comp_per_row)
    tb = max(8, int(tb))
    if tb >= B:
        return B            # single full-batch block (full-extent block is legal)
    return max(8, (tb // 8) * 8)  # keep sublane dim a multiple of 8


def triplet_contrastive_loss(anchor, positive, negative, margin=1.0, *,
                             block_rows=None, input_buffer_count=2):
    """Pallas TPU implementation of TripletContrastiveLoss.forward."""
    assert anchor.shape == positive.shape == negative.shape
    assert anchor.ndim == 2, "expected (batch, features) embeddings"
    B, D = anchor.shape
    itemsize = jnp.dtype(anchor.dtype).itemsize

    chunk = _choose_feature_chunk(D)
    num_chunks = max(1, D // chunk)
    tb = block_rows if block_rows is not None else _choose_block_rows(
        B, D, itemsize, chunk, buffer_count=input_buffer_count)
    num_tiles = pl.cdiv(B, tb)
    ragged = (B % tb) != 0

    kernel = functools.partial(
        _triplet_kernel, margin=float(margin), batch=B, block_rows=tb,
        chunk=chunk, num_chunks=num_chunks, ragged=ragged)

    # Inputs stream through VMEM with default double-buffering; a deeper queue
    # (input_buffer_count=3) can be swept if DMA gaps show at step boundaries.
    if input_buffer_count == 2:
        in_spec = pl.BlockSpec((tb, D), lambda i: (i, 0))
    else:
        in_spec = pl.BlockSpec((tb, D), lambda i: (i, 0),
                               pipeline_mode=pl.Buffered(input_buffer_count))

    # Per-tile scalar partial sum -> SMEM block (no (8,128) rule, no masked
    # partial stores, no per-step VMEM writeback DMA).
    out_spec = pl.BlockSpec((1, 1), lambda i: (i, 0), memory_space=pltpu.SMEM)

    cost = pl.CostEstimate(
        flops=8 * B * D,            # 2 subs, 2 eps adds, 2 muls, 2 reduce-adds / elem
        transcendentals=2 * B,      # two sqrts per row
        bytes_accessed=3 * B * D * itemsize + num_tiles * 4,
    )

    partial_sums = pl.pallas_call(
        kernel,
        out_shape=jax.ShapeDtypeStruct((num_tiles, 1), jnp.float32),
        grid=(num_tiles,),
        in_specs=[in_spec, in_spec, in_spec],
        out_specs=out_spec,
        compiler_params=pltpu.CompilerParams(
            dimension_semantics=("parallel",),
            vmem_limit_bytes=48 * 1024 * 1024),
        cost_estimate=cost,
    )(anchor, positive, negative)

    # Final mean over the TRUE batch size (padded rows were masked in-kernel).
    return jnp.sum(partial_sums) / B


def _reference(anchor, positive, negative, margin=1.0):
    # Pure-JAX reference for sanity checking (computed in f32).
    a = anchor.astype(jnp.float32)
    p = positive.astype(jnp.float32)
    n = negative.astype(jnp.float32)
    pos = jnp.sqrt(jnp.sum((a - p + _EPS) ** 2, axis=-1))
    neg = jnp.sqrt(jnp.sum((a - n + _EPS) ** 2, axis=-1))
    return jnp.mean(jnp.maximum(pos - neg + margin, 0.0))


if __name__ == "__main__":
    key = jax.random.PRNGKey(0)

    # (B, D, dtype, forced block_rows) -- small shapes consistent with
    # (batch, embedding_dim) inputs.
    #   cfg 1: single full-batch tile, f32
    #   cfg 2: multi-tile grid with a ragged (masked) last tile
    #   cfg 3: bf16 on the wire, f32 math in-kernel
    #   cfg 4: D multiple of 128 -> exercises the chunked compute loop
    configs = [
        (8, 32, jnp.float32, None),
        (20, 48, jnp.float32, 8),
        (16, 64, jnp.bfloat16, None),
        (16, 384, jnp.float32, None),
    ]

    for idx, (B, D, dt, tb) in enumerate(configs):
        k1, k2, k3, key = jax.random.split(key, 4)
        anchor = jax.random.normal(k1, (B, D), dtype=jnp.float32).astype(dt)
        positive = jax.random.normal(k2, (B, D), dtype=jnp.float32).astype(dt)
        negative = jax.random.normal(k3, (B, D), dtype=jnp.float32).astype(dt)

        loss = triplet_contrastive_loss(anchor, positive, negative,
                                        margin=1.0, block_rows=tb)
        jax.block_until_ready(loss)

        ref = _reference(anchor, positive, negative, margin=1.0)
        assert jnp.allclose(loss, ref, atol=1e-5, rtol=1e-5), (idx, loss, ref)

    print("KERNEL_OK")
</pallas_src>

<mosaic_0001>
module attributes {stable_mosaic.version = 11 : i64} {
  func.func @_triplet_kernel(%arg0: i32, %arg1: memref<8x32xf32, #tpu.memory_space<vmem>>, %arg2: memref<8x32xf32, #tpu.memory_space<vmem>>, %arg3: memref<8x32xf32, #tpu.memory_space<vmem>>, %arg4: memref<1x1xf32, #tpu.memory_space<smem>>) attributes {dimension_semantics = [#tpu.dimension_semantics<parallel>], iteration_bounds = array<i64: 1>, scalar_prefetch = 0 : i64, scratch_operands = 0 : i64, tpu.core_type = #tpu.core_type<tc>, window_params = [{transform_indices = @transform_0, window_bounds = array<i64: 8, 32>}, {transform_indices = @transform_1, window_bounds = array<i64: 8, 32>}, {transform_indices = @transform_2, window_bounds = array<i64: 8, 32>}, {transform_indices = @transform_3, window_bounds = array<i64: 1, 1>}]} {
    %c0 = arith.constant 0 : index
    %c0_0 = arith.constant 0 : index
    %0 = vector.load %arg1[%c0, %c0_0] : memref<8x32xf32, #tpu.memory_space<vmem>>, vector<8x32xf32>
    %c0_1 = arith.constant 0 : index
    %c0_2 = arith.constant 0 : index
    %1 = vector.load %arg2[%c0_1, %c0_2] : memref<8x32xf32, #tpu.memory_space<vmem>>, vector<8x32xf32>
    %c0_3 = arith.constant 0 : index
    %c0_4 = arith.constant 0 : index
    %2 = vector.load %arg3[%c0_3, %c0_4] : memref<8x32xf32, #tpu.memory_space<vmem>>, vector<8x32xf32>
    %3 = arith.subf %0, %1 : vector<8x32xf32>
    %cst = arith.constant 9.99999997E-7 : f32
    %4 = vector.broadcast %cst : f32 to vector<8x32xf32>
    %5 = arith.addf %3, %4 : vector<8x32xf32>
    %6 = arith.subf %0, %2 : vector<8x32xf32>
    %cst_5 = arith.constant 9.99999997E-7 : f32
    %7 = vector.broadcast %cst_5 : f32 to vector<8x32xf32>
    %8 = arith.addf %6, %7 : vector<8x32xf32>
    %9 = arith.mulf %5, %5 : vector<8x32xf32>
    %cst_6 = arith.constant dense<0.000000e+00> : vector<8xf32>
    %10 = vector.multi_reduction <add>, %9, %cst_6 [1] : vector<8x32xf32> to vector<8xf32>
    %11 = vector.shape_cast %10 : vector<8xf32> to vector<8x1xf32>
    %12 = arith.mulf %8, %8 : vector<8x32xf32>
    %cst_7 = arith.constant dense<0.000000e+00> : vector<8xf32>
    %13 = vector.multi_reduction <add>, %12, %cst_7 [1] : vector<8x32xf32> to vector<8xf32>
    %14 = vector.shape_cast %13 : vector<8xf32> to vector<8x1xf32>
    %15 = math.sqrt %11 : vector<8x1xf32>
    %16 = math.sqrt %14 : vector<8x1xf32>
    %17 = arith.subf %15, %16 : vector<8x1xf32>
    %cst_8 = arith.constant 1.000000e+00 : f32
    %18 = vector.broadcast %cst_8 : f32 to vector<8x1xf32>
    %19 = arith.addf %17, %18 : vector<8x1xf32>
    %cst_9 = arith.constant 0.000000e+00 : f32
    %20 = vector.broadcast %cst_9 : f32 to vector<8x1xf32>
    %21 = arith.maximumf %19, %20 : vector<8x1xf32>
    %22 = vector.shape_cast %21 : vector<8x1xf32> to vector<1x8x1xf32>
    %cst_10 = arith.constant dense<0.000000e+00> : vector<1xf32>
    %23 = vector.multi_reduction <add>, %22, %cst_10 [1, 2] : vector<1x8x1xf32> to vector<1xf32>
    %24 = vector.shape_cast %23 : vector<1xf32> to vector<1x1x1xf32>
    %25 = vector.extract %24[0, 0, 0] : f32 from vector<1x1x1xf32>
    %c0_11 = arith.constant 0 : index
    %c0_12 = arith.constant 0 : index
    %26 = memref.load %arg4[%c0_11, %c0_12] : memref<1x1xf32, #tpu.memory_space<smem>>
    memref.store %25, %arg4[%c0_11, %c0_12] : memref<1x1xf32, #tpu.memory_space<smem>>
    return
  }
  func.func @transform_0(%arg0: i32) -> (i32, i32) {
    %c0_i32 = arith.constant 0 : i32
    %c0_i32_0 = arith.constant 0 : i32
    return %arg0, %c0_i32 : i32, i32
  }
  func.func @transform_1(%arg0: i32) -> (i32, i32) {
    %c0_i32 = arith.constant 0 : i32
    %c0_i32_0 = arith.constant 0 : i32
    return %arg0, %c0_i32 : i32, i32
  }
  func.func @transform_2(%arg0: i32) -> (i32, i32) {
    %c0_i32 = arith.constant 0 : i32
    %c0_i32_0 = arith.constant 0 : i32
    return %arg0, %c0_i32 : i32, i32
  }
  func.func @transform_3(%arg0: i32) -> (i32, i32) {
    %c0_i32 = arith.constant 0 : i32
    %c0_i32_0 = arith.constant 0 : i32
    return %arg0, %c0_i32 : i32, i32
  }
}

</mosaic_0001>

<bundles_post_ra>
// kernel: tpu_custom_call.1
= control target key start
LH: loop header
LB: loop body
LE: loop exit
PB: predicated region body
PF: predicated region fallthrough
CT: control target
= control target key end

     0   :  { %8 = vsyncpa [#allocation3], 0  ;;  %s231_s0 = inlined_call_operand.hbm [shape: f32[8,32], index: 0, kind: input, shape index: {}]   ;;  %s232_s1 = inlined_call_operand.hbm [shape: f32[8,32], index: 1, kind: input, shape index: {}]   ;;  %s233_s2 = inlined_call_operand.hbm [shape: f32[8,32], index: 2, kind: input, shape index: {}]   ;;  %s234_s3 = inlined_call_operand.hbm [shape: f32[1,1], index: 3, kind: output, shape index: {}]  }
   0x1   :  { %9 = vsyncpa [#allocation6], 0 }
   0x2   :  { %10 = vsyncpa [#allocation4], 0  ;;  %s195_s12 = smov [#allocation5]   ;;  %s196_s14 = smov [#allocation2]  }
   0x3   :  { %s27_s13 = sshll.u32 %s195_s12, 4  ;;  %s17_s15 = sshll.u32 %s196_s14, 4  ;;  %s28_s13 = int_to_ptr.vmem [resolvable:$true] %s27_s13  ;;  %s18_s15 = int_to_ptr.vmem [resolvable:$true] %s17_s15 }
   0x4   :  { %s129_s16 = scalar_lea.vmem %s28_s13, 128  ;;  %p134_p1 = scmp.lt.s32.totalorder %s28_s13, %s28_s13 }
   0x5   :  { %p130_p0 = scmp.ne.s32.totalorder %s28_s13, %s129_s16  ;;  %p135_p2 = scmp.lt.s32.totalorder %s129_s16, %s129_s16 }
   0x7   :  { %p136_p3 = por %p135_p2, %p134_p1 }
   0x9   :  { %p137_p4 = pnand %p136_p3, %p130_p0 }
   0xb   :  { %140 = shalt.err (!%p137_p4)
}
   0xc   :  { %30 = dma.hbm_to_vmem [thread:$0]  %s232_s1, 128, %s28_s13, [#allocation6]  }
   0xd   :  { %s149_s19 = scalar_lea.vmem %s18_s15, 128  ;;  %p154_p6 = scmp.lt.s32.totalorder %s18_s15, %s18_s15 }
   0xe   :  { %p150_p5 = scmp.ne.s32.totalorder %s18_s15, %s149_s19  ;;  %p155_p7 = scmp.lt.s32.totalorder %s149_s19, %s149_s19 }
  0x10   :  { %p156_p8 = por %p155_p7, %p154_p6 }
  0x12   :  { %p157_p9 = pnand %p156_p8, %p150_p5 }
  0x14   :  { %160 = shalt.err (!%p157_p9)
}
  0x15   :  { %20 = dma.hbm_to_vmem [thread:$0]  %s231_s0, 128, %s18_s15, [#allocation3]  }
  0x16   :  { %s197_s22 = smov [#allocation7]  }
  0x17   :  { %s37_s23 = sshll.u32 %s197_s22, 4  ;;  %s38_s23 = int_to_ptr.vmem [resolvable:$true] %s37_s23 }
  0x18   :  { %s169_s24 = scalar_lea.vmem %s38_s23, 128  ;;  %p174_p11 = scmp.lt.s32.totalorder %s38_s23, %s38_s23 }
  0x19   :  { %p170_p10 = scmp.ne.s32.totalorder %s38_s23, %s169_s24  ;;  %p175_p12 = scmp.lt.s32.totalorder %s169_s24, %s169_s24 }
  0x1b   :  { %p176_p13 = por %p175_p12, %p174_p11 }
  0x1d   :  { %p177_p0 = pnand %p176_p13, %p170_p10 }
  0x1f   :  { %180 = shalt.err (!%p177_p0)
}
  0x20   :  { %40 = dma.hbm_to_vmem [thread:$0]  %s233_s2, 128, %s38_s23, [#allocation6]  }
  0x21   :  { %189 = dma.done.wait [#allocation3], 128  }
  0x22   :  { %190 = vsyncadd [#allocation3], 4294967168 }
  0x23   :  { %191 = dma.done.wait [#allocation6], 256  }
  0x24   :  { %192 = vsyncadd [#allocation6], 4294967040  ;;  %v50_v0 = vld [vmem:[#allocation2] sm:$0xff]  ;;  %v51_v1 = vld [vmem:[#allocation5] sm:$0xff]  ;;  %vm58_vm0 = vcmask 261120   ;;  %vm83_vm5 = vcmask 7168  }
  0x25   :  { %v52_v2 = vld [vmem:[#allocation7] sm:$0xff]  ;;  %v53_v3 = vsub.f32 %v50_v0, %v51_v1  ;;  %s198_s2 = smov [#allocation8]  }
  0x26   :  { %v55_v4 = vsub.f32 %v50_v0, %v52_v2 }
  0x27   :  { %v54_v5 = vadd.f32 1e-06, %v53_v3 }
  0x28   :  { %v56_v6 = vadd.f32 1e-06, %v55_v4 }
  0x29   :  { %v57_v7 = vmul.f32 %v54_v5, %v54_v5 }
  0x2a   :  { %v62_v8 = vmul.f32 %v56_v6, %v56_v6 }
  0x2b   :  { %v59_v9 = vsel %vm58_vm0, %v57_v7, 0.0 }
  0x2c   :  { %60 = vadd.xlane.f32.xlu0 %v59_v9  ;;  %v63_v10 = vsel %vm58_vm0, %v62_v8, 0.0 }
  0x30   :  { %64 = vadd.xlane.f32.xlu0 %v63_v10 }
  0xb5   :  { %v61_v11 = vpop.xlane.xlu0 %60 }
  0xb6   :  { %117 = vrsqrt.f32 %v61_v11  ;;  %vm68_vm1 = vcmp.eq.f32.partialorder %v61_v11, inf  ;;  %v71_v18 = vand.u32 2147483648, %v61_v11  ;;  %vm70_vm3 = vcmp.eq.f32.partialorder %v61_v11, 0.0 }
  0xb9   :  { %v65_v12 = vpop.xlane.xlu0 %64 }
  0xba   :  { %119 = vrsqrt.f32 %v65_v12  ;;  %vm75_vm2 = vcmp.eq.f32.partialorder %v65_v12, inf  ;;  %v78_v19 = vand.u32 2147483648, %v65_v12  ;;  %vm77_vm4 = vcmp.eq.f32.partialorder %v65_v12, 0.0 }
  0xc3   :  { %v118_v13 = vpop.eup %117 }
  0xc4   :  { %v67_v14 = vmul.f32 %v118_v13, %v61_v11 }
  0xc6   :  { %v69_v17 = vsel %vm68_vm1, %v61_v11, %v67_v14 }
  0xc7   :  { %v120_v15 = vpop.eup %119  ;;  %v72_v21 = vsel %vm70_vm3, %v71_v18, %v69_v17 }
  0xc8   :  { %v74_v16 = vmul.f32 %v120_v15, %v65_v12 }
  0xca   :  { %v76_v20 = vsel %vm75_vm2, %v65_v12, %v74_v16 }
  0xcb   :  { %v79_v22 = vsel %vm77_vm4, %v78_v19, %v76_v20 }
  0xcc   :  { %v80_v23 = vsub.f32 %v72_v21, %v79_v22 }
  0xce   :  { %v81_v24 = vadd.f32 1.0, %v80_v23 }
  0xd0   :  { %v82_v25 = vmax.f32 %v81_v24, 0.0 }
  0xd2   :  { %v84_v26 = vsel %vm83_vm5, %v82_v25, 0.0 }
  0xd3   :  { %85 = vadd.xlane.f32.xlu1 %v84_v26 }
 0x15c   :  { %v86_v27 = vpop.xlane.xlu1 %85 }
 0x15d   :  { %v87_v28 = vrot.slane %v86_v27, 4 }
 0x15f   :  { %v88_v29 = vadd.f32 %v87_v28, %v86_v27 }
 0x161   :  { %v89_v30 = vrot.slane %v88_v29, 2 }
 0x163   :  { %v90_v31 = vadd.f32 %v89_v30, %v88_v29 }
 0x165   :  { %v91_v32 = vrot.slane %v90_v31, 1 }
 0x167   :  { %v92_v33 = vadd.f32 %v91_v32, %v90_v31 }
 0x169   :  { %111 = vpush %v92_v33 }
 0x19a   :  { %s112_s0 = spop %111 }
 0x19b   :  { %95 = sst [smem:[#allocation8]] %s112_s0 }
 0x19c   :  { %103 = dma.smem_to_hbm %s198_s2, 16, %s234_s3, [#allocation4]  }
 0x19d   :  { %193 = dma.done.wait [#allocation4], 16  }
 0x19e   :  { %194 = vsyncadd [#allocation4], 4294967280 }
 0x19f   :  { %107 = sfence }
 0x1a0   :  { %108 = vsyncpa [#allocation3], 1 }
 0x1a1   :  { %109 = vsyncpa [#allocation6], 1 }
 0x1a2   :  { %110 = vsyncpa [#allocation4], 1 }

</bundles_post_ra>
